<compile_context>
chip_gen: v7x
topology: tpu7x:2x2x1
jax: 0.10.0
libtpu: 0.0.40
codegen_flags: <defaults>
</compile_context>

<pallas_src>
import functools

import jax
import jax.numpy as jnp
from jax.experimental import pallas as pl
from jax.experimental.pallas import tpu as pltpu


def _round_up(x, m):
    return ((x + m - 1) // m) * m


_TB_CANDIDATES = (512, 256, 128, 64, 32, 16)


def _choose_batch_tile(batch, block_b):
    """Pick (tile, padded_batch): minimize padded rows, prefer >=2 tiles (v7x),
    then fewer/larger tiles to amortize the ~0.35us per-grid-step overhead."""
    block_b = max(16, block_b)
    b_min = _round_up(max(batch, 16), 16)
    best_key, best = None, (16, b_min)
    for tb in _TB_CANDIDATES:
        if tb > block_b:
            continue
        b_pad = _round_up(b_min, tb)
        n_tiles = b_pad // tb
        waste = b_pad - batch
        key = (waste, 0 if n_tiles >= 2 else 1, n_tiles)
        if best_key is None or key < best_key:
            best_key, best = key, (tb, b_pad)
    return best


def _mlp_forward_kernel(x_ref, w1_ref, b1_ref, w2_ref, b2_ref, w3_ref, b3_ref,
                        o_ref):
    """Fused 3-layer MLP forward for one batch tile.

    x arrives as f32 (single HBM read) and is cast to bf16 in-kernel right
    before the first MXU matmul; biases/ReLU stay in f32.
    """
    x = x_ref[...].astype(jnp.bfloat16)                              # (TB, IN)
    h1 = jnp.dot(x, w1_ref[...], preferred_element_type=jnp.float32)
    h1 = jnp.maximum(h1 + b1_ref[...], 0.0)                          # f32 VPU
    h2 = jnp.dot(h1.astype(jnp.bfloat16), w2_ref[...],
                 preferred_element_type=jnp.float32)
    h2 = jnp.maximum(h2 + b2_ref[...], 0.0)
    out = jnp.dot(h2.astype(jnp.bfloat16), w3_ref[...],
                  preferred_element_type=jnp.float32)
    o_ref[...] = (out + b3_ref[...]).astype(o_ref.dtype)             # bf16 out


def prepare_params(params):
    """ONE-TIME parameter prep (hoisted out of forward): bf16 weight casts,
    f32 biases, and lane-dense zero-padding of the classifier to 128 columns.
    Returns (prepped_params, n_classes)."""
    w1, b1, w2, b2, w3, b3 = params
    hidden = w1.shape[1]
    n_classes = int(w3.shape[1])
    n_pad = _round_up(n_classes, 128)

    w3p = jnp.zeros((hidden, n_pad), jnp.bfloat16).at[:, :n_classes].set(
        w3.astype(jnp.bfloat16))
    b3p = jnp.zeros((1, n_pad), jnp.float32).at[:, :n_classes].set(
        b3.reshape(1, -1).astype(jnp.float32))

    prepped = (
        w1.astype(jnp.bfloat16),
        b1.reshape(1, -1).astype(jnp.float32),
        w2.astype(jnp.bfloat16),
        b2.reshape(1, -1).astype(jnp.float32),
        w3p,
        b3p,
    )
    return prepped, n_classes


@functools.partial(jax.jit, static_argnames=("n_classes", "block_b"))
def continual_model_forward(x_nchw, prepped_params, *, n_classes, block_b=256):
    """ContinualModel.forward: returns self.net(x) (backbone logits), f32."""
    w1b, b1f, w2b, b2f, w3p, b3p = prepped_params
    B = x_nchw.shape[0]
    in_dim, hidden = w1b.shape
    n_pad = w3p.shape[1]

    # Flatten exactly like torch x.view(B, -1); keep f32 (cast happens in-kernel).
    x2d = x_nchw.reshape(B, -1).astype(jnp.float32)
    assert x2d.shape[1] == in_dim

    # Batch tiling: minimal padding, >=2 tiles when possible (v7x dual-TC).
    tb, b_pad = _choose_batch_tile(B, block_b)
    if b_pad != B:
        x2d = jnp.pad(x2d, ((0, b_pad - B), (0, 0)))
    n_tiles = b_pad // tb

    # VMEM budget: weights single-buffered only when the default double-buffer
    # would be heavy (large in_dim backbones on v7x's 64 MiB VMEM).
    w_bytes = ((in_dim * hidden + hidden * hidden + hidden * n_pad) * 2
               + (2 * hidden + n_pad) * 4)
    single_buffer_weights = (2 * w_bytes) > (24 << 20)
    wbuf = 1 if single_buffer_weights else 2
    vmem_est = (2 * tb * in_dim * 4       # f32 x tile, double-buffered
                + 2 * tb * n_pad * 2      # bf16 out tile, double-buffered
                + wbuf * w_bytes
                + 4 * tb * hidden * 4)    # f32 intermediate headroom
    vmem_limit = int(min(100 << 20, max(32 << 20, 2 * vmem_est)))

    def full(shape):
        # Weights/biases: one block = whole array, VMEM-resident across tiles.
        if single_buffer_weights:
            return pl.BlockSpec(shape, lambda i: (0, 0),
                                pipeline_mode=pl.Buffered(1))
        return pl.BlockSpec(shape, lambda i: (0, 0))

    flops = 2 * b_pad * (in_dim * hidden + hidden * hidden + hidden * n_pad)
    bytes_accessed = b_pad * in_dim * 4 + w_bytes + b_pad * n_pad * 2

    out_padded = pl.pallas_call(
        _mlp_forward_kernel,
        out_shape=jax.ShapeDtypeStruct((b_pad, n_pad), jnp.bfloat16),
        grid=(n_tiles,),
        in_specs=[
            pl.BlockSpec((tb, in_dim), lambda i: (i, 0)),   # x batch tile (f32)
            full((in_dim, hidden)),                         # W1 (bf16)
            full((1, hidden)),                              # b1 (f32)
            full((hidden, hidden)),                         # W2 (bf16)
            full((1, hidden)),                              # b2 (f32)
            full((hidden, n_pad)),                          # W3 padded (bf16)
            full((1, n_pad)),                               # b3 padded (f32)
        ],
        out_specs=pl.BlockSpec((tb, n_pad), lambda i: (i, 0)),
        compiler_params=pltpu.CompilerParams(
            dimension_semantics=("parallel",),
            vmem_limit_bytes=vmem_limit),
        cost_estimate=pl.CostEstimate(
            flops=flops, transcendentals=0, bytes_accessed=bytes_accessed),
    )(x2d, w1b, b1f, w2b, b2f, w3p, b3p)

    return out_padded[:B, :n_classes].astype(jnp.float32)


def init_backbone_params(key, in_dim, hidden, n_classes):
    """Deterministic synthetic backbone parameters (no checkpoint load)."""
    ks = jax.random.split(key, 6)

    def lin(kw, kb, fan_in, fan_out):
        scale = 1.0 / jnp.sqrt(jnp.float32(fan_in))
        w = jax.random.uniform(kw, (fan_in, fan_out), jnp.float32, -scale, scale)
        b = jax.random.uniform(kb, (1, fan_out), jnp.float32, -scale, scale)
        return w, b

    w1, b1 = lin(ks[0], ks[1], in_dim, hidden)
    w2, b2 = lin(ks[2], ks[3], hidden, hidden)
    w3, b3 = lin(ks[4], ks[5], hidden, n_classes)
    return (w1, b1, w2, b2, w3, b3)


def reference_forward(x_nchw, params):
    """Plain-JAX reference with the same bf16-matmul / f32-accumulate precisions."""
    w1, b1, w2, b2, w3, b3 = params
    x = x_nchw.reshape(x_nchw.shape[0], -1).astype(jnp.bfloat16)
    h1 = jnp.dot(x, w1.astype(jnp.bfloat16),
                 preferred_element_type=jnp.float32) + b1
    h1 = jnp.maximum(h1, 0.0)
    h2 = jnp.dot(h1.astype(jnp.bfloat16), w2.astype(jnp.bfloat16),
                 preferred_element_type=jnp.float32) + b2
    h2 = jnp.maximum(h2, 0.0)
    return jnp.dot(h2.astype(jnp.bfloat16), w3.astype(jnp.bfloat16),
                   preferred_element_type=jnp.float32) + b3


if __name__ == "__main__":
    key = jax.random.PRNGKey(0)
    k_x, k_p = jax.random.split(key)

    B, C, H, W = 2, 4, 16, 16          # small NCHW batch of inputs
    HIDDEN, N_CLASSES = 128, 10
    IN_DIM = C * H * W

    x = jax.random.normal(k_x, (B, C, H, W), jnp.float32)
    raw_params = init_backbone_params(k_p, IN_DIM, HIDDEN, N_CLASSES)

    # One-time weight prep (cast + classifier pad) — reused by every forward().
    prepped, n_classes = prepare_params(raw_params)
    prepped = jax.block_until_ready(prepped)

    out = continual_model_forward(x, prepped, n_classes=n_classes)
    out = jax.block_until_ready(out)

    ref = reference_forward(x, raw_params)
    assert out.shape == (B, N_CLASSES)
    assert jnp.allclose(out, ref, atol=2e-2, rtol=2e-2)

    # TODO(synk): observe()/SGD optimizer step, loss and transforms are the
    # training loop, not forward(); only forward() is implemented as a kernel.
    print("KERNEL_OK")
</pallas_src>

<mosaic_0001>
module attributes {stable_mosaic.version = 11 : i64} {
  func.func @_mlp_forward_kernel(%arg0: i32, %arg1: memref<16x1024xf32, #tpu.memory_space<vmem>>, %arg2: memref<1024x128xbf16, #tpu.memory_space<vmem>>, %arg3: memref<1x128xf32, #tpu.memory_space<vmem>>, %arg4: memref<128x128xbf16, #tpu.memory_space<vmem>>, %arg5: memref<1x128xf32, #tpu.memory_space<vmem>>, %arg6: memref<128x128xbf16, #tpu.memory_space<vmem>>, %arg7: memref<1x128xf32, #tpu.memory_space<vmem>>, %arg8: memref<16x128xbf16, #tpu.memory_space<vmem>>) attributes {dimension_semantics = [#tpu.dimension_semantics<parallel>], iteration_bounds = array<i64: 1>, scalar_prefetch = 0 : i64, scratch_operands = 0 : i64, tpu.core_type = #tpu.core_type<tc>, window_params = [{transform_indices = @transform_0, window_bounds = array<i64: 16, 1024>}, {pipeline_mode = #tpu.pipeline_mode<synchronous>, transform_indices = @transform_1, window_bounds = array<i64: 1024, 128>}, {pipeline_mode = #tpu.pipeline_mode<synchronous>, transform_indices = @transform_2, window_bounds = array<i64: 1, 128>}, {pipeline_mode = #tpu.pipeline_mode<synchronous>, transform_indices = @transform_3, window_bounds = array<i64: 128, 128>}, {pipeline_mode = #tpu.pipeline_mode<synchronous>, transform_indices = @transform_4, window_bounds = array<i64: 1, 128>}, {pipeline_mode = #tpu.pipeline_mode<synchronous>, transform_indices = @transform_5, window_bounds = array<i64: 128, 128>}, {pipeline_mode = #tpu.pipeline_mode<synchronous>, transform_indices = @transform_6, window_bounds = array<i64: 1, 128>}, {transform_indices = @transform_7, window_bounds = array<i64: 16, 128>}]} {
    %c0 = arith.constant 0 : index
    %c0_0 = arith.constant 0 : index
    %0 = vector.load %arg1[%c0, %c0_0] : memref<16x1024xf32, #tpu.memory_space<vmem>>, vector<16x1024xf32>
    %1 = arith.truncf %0 : vector<16x1024xf32> to vector<16x1024xbf16>
    %c0_1 = arith.constant 0 : index
    %c0_2 = arith.constant 0 : index
    %2 = vector.load %arg2[%c0_1, %c0_2] : memref<1024x128xbf16, #tpu.memory_space<vmem>>, vector<1024x128xbf16>
    %cst = arith.constant dense<0.000000e+00> : vector<16x128xf32>
    %3 = tpu.matmul %1, %2, %cst {dimension_numbers = #tpu.dot_dimension_numbers<[1], [0], [0], [1], [0, 0, 1, 1], [], []>} : vector<16x1024xbf16>, vector<1024x128xbf16>, vector<16x128xf32> -> vector<16x128xf32>
    %c0_3 = arith.constant 0 : index
    %c0_4 = arith.constant 0 : index
    %4 = vector.load %arg3[%c0_3, %c0_4] : memref<1x128xf32, #tpu.memory_space<vmem>>, vector<1x128xf32>
    %5 = vector.broadcast %4 : vector<1x128xf32> to vector<16x128xf32>
    %6 = arith.addf %3, %5 : vector<16x128xf32>
    %cst_5 = arith.constant 0.000000e+00 : f32
    %7 = vector.broadcast %cst_5 : f32 to vector<16x128xf32>
    %8 = arith.maximumf %6, %7 : vector<16x128xf32>
    %9 = arith.truncf %8 : vector<16x128xf32> to vector<16x128xbf16>
    %c0_6 = arith.constant 0 : index
    %c0_7 = arith.constant 0 : index
    %10 = vector.load %arg4[%c0_6, %c0_7] : memref<128x128xbf16, #tpu.memory_space<vmem>>, vector<128x128xbf16>
    %cst_8 = arith.constant dense<0.000000e+00> : vector<16x128xf32>
    %11 = tpu.matmul %9, %10, %cst_8 {dimension_numbers = #tpu.dot_dimension_numbers<[1], [0], [0], [1], [0, 0, 1, 1], [], []>} : vector<16x128xbf16>, vector<128x128xbf16>, vector<16x128xf32> -> vector<16x128xf32>
    %c0_9 = arith.constant 0 : index
    %c0_10 = arith.constant 0 : index
    %12 = vector.load %arg5[%c0_9, %c0_10] : memref<1x128xf32, #tpu.memory_space<vmem>>, vector<1x128xf32>
    %13 = vector.broadcast %12 : vector<1x128xf32> to vector<16x128xf32>
    %14 = arith.addf %11, %13 : vector<16x128xf32>
    %cst_11 = arith.constant 0.000000e+00 : f32
    %15 = vector.broadcast %cst_11 : f32 to vector<16x128xf32>
    %16 = arith.maximumf %14, %15 : vector<16x128xf32>
    %17 = arith.truncf %16 : vector<16x128xf32> to vector<16x128xbf16>
    %c0_12 = arith.constant 0 : index
    %c0_13 = arith.constant 0 : index
    %18 = vector.load %arg6[%c0_12, %c0_13] : memref<128x128xbf16, #tpu.memory_space<vmem>>, vector<128x128xbf16>
    %cst_14 = arith.constant dense<0.000000e+00> : vector<16x128xf32>
    %19 = tpu.matmul %17, %18, %cst_14 {dimension_numbers = #tpu.dot_dimension_numbers<[1], [0], [0], [1], [0, 0, 1, 1], [], []>} : vector<16x128xbf16>, vector<128x128xbf16>, vector<16x128xf32> -> vector<16x128xf32>
    %c0_15 = arith.constant 0 : index
    %c0_16 = arith.constant 0 : index
    %20 = vector.load %arg7[%c0_15, %c0_16] : memref<1x128xf32, #tpu.memory_space<vmem>>, vector<1x128xf32>
    %21 = vector.broadcast %20 : vector<1x128xf32> to vector<16x128xf32>
    %22 = arith.addf %19, %21 : vector<16x128xf32>
    %23 = arith.truncf %22 : vector<16x128xf32> to vector<16x128xbf16>
    %c0_17 = arith.constant 0 : index
    %c0_18 = arith.constant 0 : index
    %24 = vector.load %arg8[%c0_17, %c0_18] : memref<16x128xbf16, #tpu.memory_space<vmem>>, vector<16x128xbf16>
    tpu.vector_store %arg8[%c0_17, %c0_18], %23 {strides = array<i32>} : memref<16x128xbf16, #tpu.memory_space<vmem>>, vector<16x128xbf16>,
    return
  }
  func.func @transform_0(%arg0: i32) -> (i32, i32) {
    %c0_i32 = arith.constant 0 : i32
    %c0_i32_0 = arith.constant 0 : i32
    return %arg0, %c0_i32 : i32, i32
  }
  func.func @transform_1(%arg0: i32) -> (i32, i32) {
    %c0_i32 = arith.constant 0 : i32
    %c0_i32_0 = arith.constant 0 : i32
    %c0_i32_1 = arith.constant 0 : i32
    return %c0_i32, %c0_i32_0 : i32, i32
  }
  func.func @transform_2(%arg0: i32) -> (i32, i32) {
    %c0_i32 = arith.constant 0 : i32
    %c0_i32_0 = arith.constant 0 : i32
    %c0_i32_1 = arith.constant 0 : i32
    return %c0_i32, %c0_i32_0 : i32, i32
  }
  func.func @transform_3(%arg0: i32) -> (i32, i32) {
    %c0_i32 = arith.constant 0 : i32
    %c0_i32_0 = arith.constant 0 : i32
    %c0_i32_1 = arith.constant 0 : i32
    return %c0_i32, %c0_i32_0 : i32, i32
  }
  func.func @transform_4(%arg0: i32) -> (i32, i32) {
    %c0_i32 = arith.constant 0 : i32
    %c0_i32_0 = arith.constant 0 : i32
    %c0_i32_1 = arith.constant 0 : i32
    return %c0_i32, %c0_i32_0 : i32, i32
  }
  func.func @transform_5(%arg0: i32) -> (i32, i32) {
    %c0_i32 = arith.constant 0 : i32
    %c0_i32_0 = arith.constant 0 : i32
    %c0_i32_1 = arith.constant 0 : i32
    return %c0_i32, %c0_i32_0 : i32, i32
  }
  func.func @transform_6(%arg0: i32) -> (i32, i32) {
    %c0_i32 = arith.constant 0 : i32
    %c0_i32_0 = arith.constant 0 : i32
    %c0_i32_1 = arith.constant 0 : i32
    return %c0_i32, %c0_i32_0 : i32, i32
  }
  func.func @transform_7(%arg0: i32) -> (i32, i32) {
    %c0_i32 = arith.constant 0 : i32
    %c0_i32_0 = arith.constant 0 : i32
    return %arg0, %c0_i32 : i32, i32
  }
}

</mosaic_0001>

<bundles_post_ra>
// kernel: continual_model_forward.1
= control target key start
LH: loop header
LB: loop body
LE: loop exit
PB: predicated region body
PF: predicated region fallthrough
CT: control target
= control target key end

     0   :  { %12 = vsyncpa [#allocation3], 0  ;;  %s1340_s24 = smov [#allocation2]   ;;  %s1523_s0 = inlined_call_operand.vmem [shape: f32[16,1024], index: 0, kind: input, shape index: {}]   ;;  %s1524_s1 = inlined_call_operand.hbm [shape: bf16[1024,128], index: 1, kind: input, shape index: {}]   ;;  %s1525_s2 = inlined_call_operand.vmem [shape: f32[1,128], index: 2, kind: input, shape index: {}]   ;;  %s1526_s3 = inlined_call_operand.vmem [shape: bf16[128,128], index: 3, kind: input, shape index: {}]   ;;  %s1527_s4 = inlined_call_operand.vmem [shape: f32[1,128], index: 4, kind: input, shape index: {}]   ;;  %s1528_s5 = inlined_call_operand.vmem [shape: bf16[128,128], index: 5, kind: input, shape index: {}]   ;;  %s1529_s6 = inlined_call_operand.vmem [shape: f32[1,128], index: 6, kind: input, shape index: {}]   ;;  %s1530_s7 = inlined_call_operand.vmem [shape: bf16[16,128], index: 7, kind: output, shape index: {}]  }
   0x1   :  { %s20_s25 = sshll.u32 %s1340_s24, 4  ;;  %s1316_s28 = scalar_lea.hbm %s1524_s1, 8192  ;;  %s21_s25 = int_to_ptr.vmem [resolvable:$true] %s20_s25 }
   0x2   :  { %p1317_p0 = scmp.ne.s32.totalorder %s1524_s1, %s1316_s28  ;;  %p1320_p1 = scmp.lt.u32.totalorder %s1316_s28, %s1524_s1 }
   0x4   :  { %p1322_p2 = pnand %p1320_p1, %p1317_p0 }
   0x6   :  { %1325 = shalt.err (!%p1322_p2)
}
   0x7   :  { %s1326_s10 = scalar_lea.vmem %s21_s25, 8192  ;;  %p1331_p4 = scmp.lt.s32.totalorder %s21_s25, %s21_s25 }
   0x8   :  { %p1327_p3 = scmp.ne.s32.totalorder %s21_s25, %s1326_s10  ;;  %p1332_p5 = scmp.lt.s32.totalorder %s1326_s10, %s1326_s10 }
   0xa   :  { %p1333_p6 = por %p1332_p5, %p1331_p4 }
   0xc   :  { %p1334_p7 = pnand %p1333_p6, %p1327_p3 }
   0xe   :  { %1337 = shalt.err (!%p1334_p7)
}
   0xf   :  { %s1341_s11 = smov 64   ;;  %s1342_s12 = smov 4  }
  0x10   :  { %26 = dma.hbm_to_vmem [thread:$0]  %s1524_s1, 8192, %s21_s25, [#allocation3], %s1341_s11, %s1341_s11, %s1342_s12  }
  0x11   :  { %1338 = dma.done.wait [#allocation3], 8192  }
  0x12   :  { %1339 = vsyncadd [#allocation3], 4294959104  ;;  %v1236_v0 = vld [vmem:[#allocation2 + $0x40] sm:$0xff]   ;;  %v1240_v4 = vld [vmem:[#allocation2 + $0x48] sm:$0xff]   ;;  %vm1344_vm0 = vmmov 0  }
  0x13   :  { %v1237_v1 = vld [vmem:[#allocation2 + $0xc0] sm:$0xff]   ;;  %1085 = vmatprep.subr.bf16.mxu0 %v1236_v0  ;;  %v1241_v5 = vld [vmem:[#allocation2 + $0xc8] sm:$0xff]   ;;  %v1244_v8 = vld [vmem:[#allocation2 + $0x50] sm:$0xff]  }
  0x14   :  { %v1238_v2 = vld [vmem:[#allocation2] sm:$0xff]   ;;  %1107 = vmatprep.subr.bf16.mxu1 %v1237_v1  ;;  %v1242_v6 = vld [vmem:[#allocation2 + $0x8] sm:$0xff]   ;;  %v1245_v9 = vld [vmem:[#allocation2 + $0xd0] sm:$0xff]  }
  0x15   :  { %v1239_v3 = vld [vmem:[#allocation2 + $0x80] sm:$0xff]   ;;  %1086 = vmatpush3.bf16.msra.mxu0 %v1238_v2  ;;  %v1243_v7 = vld [vmem:[#allocation2 + $0x88] sm:$0xff]   ;;  %v1246_v10 = vld [vmem:[#allocation2 + $0x10] sm:$0xff]  }
  0x16   :  { %1108 = vmatpush3.bf16.msra.mxu1 %v1239_v3  ;;  %1087 = vmatprep.subr.bf16.mxu0 %v1240_v4  ;;  %v1247_v11 = vld [vmem:[#allocation2 + $0x90] sm:$0xff]   ;;  %v1248_v12 = vld [vmem:[#allocation2 + $0x58] sm:$0xff]   ;;  %v1252_v16 = vld [vmem:[#allocation2 + $0x60] sm:$0xff]  }
  0x17   :  { %1109 = vmatprep.subr.bf16.mxu1 %v1241_v5  ;;  %v1249_v13 = vld [vmem:[#allocation2 + $0xd8] sm:$0xff]   ;;  %v1253_v17 = vld [vmem:[#allocation2 + $0xe0] sm:$0xff]   ;;  %v1256_v20 = vld [vmem:[#allocation2 + $0x68] sm:$0xff]  }
  0x18   :  { %v1250_v14 = vld [vmem:[#allocation2 + $0x18] sm:$0xff]   ;;  %v1254_v18 = vld [vmem:[#allocation2 + $0x20] sm:$0xff]   ;;  %v1257_v21 = vld [vmem:[#allocation2 + $0xe8] sm:$0xff]  }
  0x19   :  { %1088 = vmatpush3.bf16.msra.mxu0 %v1242_v6  ;;  %v1251_v15 = vld [vmem:[#allocation2 + $0x98] sm:$0xff]   ;;  %v1255_v19 = vld [vmem:[#allocation2 + $0xa0] sm:$0xff]   ;;  %v1258_v22 = vld [vmem:[#allocation2 + $0x28] sm:$0xff]  }
  0x1a   :  { %1110 = vmatpush3.bf16.msra.mxu1 %v1243_v7  ;;  %1089 = vmatprep.subr.bf16.mxu0 %v1244_v8  ;;  %v1259_v23 = vld [vmem:[#allocation2 + $0xa8] sm:$0xff]   ;;  %v1260_v24 = vld [vmem:[#allocation2 + $0x70] sm:$0xff]   ;;  %v1264_v28 = vld [vmem:[#allocation2 + $0x78] sm:$0xff]  }
  0x1b   :  { %1111 = vmatprep.subr.bf16.mxu1 %v1245_v9  ;;  %v1261_v25 = vld [vmem:[#allocation2 + $0xf0] sm:$0xff]   ;;  %v1265_v29 = vld [vmem:[#allocation2 + $0xf8] sm:$0xff]   ;;  %v42_v32 = vld [vmem:[%s1523_s0 + $0x8] sm:$0xff] }
  0x1c   :  { %v1262_v26 = vld [vmem:[#allocation2 + $0x30] sm:$0xff]   ;;  %v1266_v30 = vld [vmem:[#allocation2 + $0x38] sm:$0xff]   ;;  %v50_v33 = vld [vmem:[%s1523_s0 + $0x48] sm:$0xff] }
  0x1d   :  { %1090 = vmatpush3.bf16.msra.mxu0 %v1246_v10  ;;  %v1263_v27 = vld [vmem:[#allocation2 + $0xb0] sm:$0xff]   ;;  %v1267_v31 = vld [vmem:[#allocation2 + $0xb8] sm:$0xff]   ;;  %v58_v35 = vpack.c.bf16 %v50_v33, %v42_v32  ;;  %v41_v37 = vld [vmem:[%s1523_s0] sm:$0xff] }
  0x1e   :  { %1112 = vmatpush3.bf16.msra.mxu1 %v1247_v11  ;;  %1091 = vmatprep.subr.bf16.mxu0 %v1248_v12  ;;  %v44_v34 = vld [vmem:[%s1523_s0 + $0x18] sm:$0xff]  ;;  %v49_v38 = vld [vmem:[%s1523_s0 + $0x40] sm:$0xff]  ;;  %v43_v41 = vld [vmem:[%s1523_s0 + $0x10] sm:$0xff] }
  0x1f   :  { %1113 = vmatprep.subr.bf16.mxu1 %v1249_v13  ;;  %v52_v36 = vld [vmem:[%s1523_s0 + $0x58] sm:$0xff]  ;;  %v57_v40 = vpack.c.bf16 %v49_v38, %v41_v37  ;;  %v51_v42 = vld [vmem:[%s1523_s0 + $0x50] sm:$0xff]  ;;  %616 = vmatprep.mubr.bf16.mxu0 %v58_v35  ;;  %v1268_v44 = vld [vmem:[#allocation2 + $0x140] sm:$0xff]  }
  0x20   :  { %v60_v39 = vpack.c.bf16 %v52_v36, %v44_v34  ;;  %v59_v43 = vpack.c.bf16 %v51_v42, %v43_v41  ;;  %v1269_v45 = vld [vmem:[#allocation2 + $0x1c0] sm:$0xff]   ;;  %v1272_v48 = vld [vmem:[#allocation2 + $0x148] sm:$0xff]   ;;  %v1276_v52 = vld [vmem:[#allocation2 + $0x150] sm:$0xff]  }
  0x21   :  { %1092 = vmatpush3.bf16.msra.mxu0 %v1250_v14  ;;  %v1270_v46 = vld [vmem:[#allocation2 + $0x100] sm:$0xff]   ;;  %v1273_v49 = vld [vmem:[#allocation2 + $0x1c8] sm:$0xff]   ;;  %v1277_v53 = vld [vmem:[#allocation2 + $0x1d0] sm:$0xff]  }
  0x22   :  { %1114 = vmatpush3.bf16.msra.mxu1 %v1251_v15  ;;  %1093 = vmatprep.subr.bf16.mxu0 %v1252_v16  ;;  %v1271_v47 = vld [vmem:[#allocation2 + $0x180] sm:$0xff]   ;;  %v1274_v50 = vld [vmem:[#allocation2 + $0x108] sm:$0xff]   ;;  %v1278_v54 = vld [vmem:[#allocation2 + $0x110] sm:$0xff]  }
  0x23   :  { %1115 = vmatprep.subr.bf16.mxu1 %v1253_v17  ;;  %657 = vmatprep.mubr.bf16.mxu1 %v60_v39  ;;  %v1275_v51 = vld [vmem:[#allocation2 + $0x188] sm:$0xff]   ;;  %v1279_v55 = vld [vmem:[#allocation2 + $0x190] sm:$0xff]   ;;  %v1280_v56 = vld [vmem:[#allocation2 + $0x158] sm:$0xff]  }
  0x24   :  { %v1281_v57 = vld [vmem:[#allocation2 + $0x1d8] sm:$0xff]   ;;  %v1284_v60 = vld [vmem:[#allocation2 + $0x160] sm:$0xff]   ;;  %v1288_v0 = vld [vmem:[#allocation2 + $0x168] sm:$0xff]  }
  0x25   :  { %1094 = vmatpush3.bf16.msra.mxu0 %v1254_v18  ;;  %v1282_v58 = vld [vmem:[#allocation2 + $0x118] sm:$0xff]   ;;  %v1285_v61 = vld [vmem:[#allocation2 + $0x1e0] sm:$0xff]   ;;  %v1289_v1 = vld [vmem:[#allocation2 + $0x1e8] sm:$0xff]  }
  0x26   :  { %1116 = vmatpush3.bf16.msra.mxu1 %v1255_v19  ;;  %1095 = vmatprep.subr.bf16.mxu0 %v1256_v20  ;;  %v1283_v59 = vld [vmem:[#allocation2 + $0x198] sm:$0xff]   ;;  %v1286_v62 = vld [vmem:[#allocation2 + $0x120] sm:$0xff]   ;;  %v1290_v2 = vld [vmem:[#allocation2 + $0x128] sm:$0xff]  }
  0x27   :  { %1117 = vmatprep.subr.bf16.mxu1 %v1257_v21  ;;  %v1287_v63 = vld [vmem:[#allocation2 + $0x1a0] sm:$0xff]   ;;  %v1291_v3 = vld [vmem:[#allocation2 + $0x1a8] sm:$0xff]   ;;  %v1292_v4 = vld [vmem:[#allocation2 + $0x170] sm:$0xff]  }
  0x28   :  { %v1293_v5 = vld [vmem:[#allocation2 + $0x1f0] sm:$0xff]   ;;  %v1296_v8 = vld [vmem:[#allocation2 + $0x178] sm:$0xff]   ;;  %v46_v12 = vld [vmem:[%s1523_s0 + $0x28] sm:$0xff] }
  0x29   :  { %1096 = vmatpush3.bf16.msra.mxu0 %v1258_v22  ;;  %v1294_v6 = vld [vmem:[#allocation2 + $0x130] sm:$0xff]   ;;  %v1297_v9 = vld [vmem:[#allocation2 + $0x1f8] sm:$0xff]   ;;  %v54_v13 = vld [vmem:[%s1523_s0 + $0x68] sm:$0xff] }
  0x2a   :  { %1118 = vmatpush3.bf16.msra.mxu1 %v1259_v23  ;;  %1097 = vmatprep.subr.bf16.mxu0 %v1260_v24  ;;  %v1295_v7 = vld [vmem:[#allocation2 + $0x1b0] sm:$0xff]   ;;  %v1298_v10 = vld [vmem:[#allocation2 + $0x138] sm:$0xff]   ;;  %v62_v16 = vpack.c.bf16 %v54_v13, %v46_v12  ;;  %v45_v18 = vld [vmem:[%s1523_s0 + $0x20] sm:$0xff] }
  0x2b   :  { %1119 = vmatprep.subr.bf16.mxu1 %v1261_v25  ;;  %v1299_v11 = vld [vmem:[#allocation2 + $0x1b8] sm:$0xff]   ;;  %v53_v19 = vld [vmem:[%s1523_s0 + $0x60] sm:$0xff]  ;;  %v47_v20 = vld [vmem:[%s1523_s0 + $0x30] sm:$0xff]  ;;  %v1343_v25 = vmov 0.0  }
  0x2c   :  { %v48_v14 = vld [vmem:[%s1523_s0 + $0x38] sm:$0xff]  ;;  %v61_v21 = vpack.c.bf16 %v53_v19, %v45_v18  ;;  %v55_v22 = vld [vmem:[%s1523_s0 + $0x70] sm:$0xff]  ;;  %v1300_v24 = vld [vmem:[%s1526_s3] sm:$0xff]  }
  0x2d   :  { %1098 = vmatpush3.bf16.msra.mxu0 %v1262_v26  ;;  %v56_v15 = vld [vmem:[%s1523_s0 + $0x78] sm:$0xff]  ;;  %v63_v23 = vpack.c.bf16 %v55_v22, %v47_v20  ;;  %v1301_v26 = vld [vmem:[%s1526_s3 + $0x8] sm:$0xff]   ;;  %v1308_v33 = vld [vmem:[%s1528_s5] sm:$0xff]  }
  0x2e   :  { %1120 = vmatpush3.bf16.msra.mxu1 %v1263_v27  ;;  %1099 = vmatprep.subr.bf16.mxu0 %v1264_v28  ;;  %v64_v17 = vpack.c.bf16 %v56_v15, %v48_v14  ;;  %v1302_v27 = vld [vmem:[%s1526_s3 + $0x10] sm:$0xff]   ;;  %v1303_v28 = vld [vmem:[%s1526_s3 + $0x18] sm:$0xff]   ;;  %v1309_v34 = vld [vmem:[%s1528_s5 + $0x8] sm:$0xff]  }
  0x2f   :  { %1121 = vmatprep.subr.bf16.mxu1 %v1265_v29  ;;  %v1304_v29 = vld [vmem:[%s1526_s3 + $0x20] sm:$0xff]   ;;  %v1307_v32 = vld [vmem:[%s1526_s3 + $0x38] sm:$0xff]   ;;  %v1310_v35 = vld [vmem:[%s1528_s5 + $0x10] sm:$0xff]  }
  0x30   :  { %v1311_v36 = vld [vmem:[%s1528_s5 + $0x18] sm:$0xff]   ;;  %v1312_v37 = vld [vmem:[%s1528_s5 + $0x20] sm:$0xff]   ;;  %v1313_v38 = vld [vmem:[%s1528_s5 + $0x28] sm:$0xff]  }
  0x31   :  { %1100 = vmatpush3.bf16.msra.mxu0 %v1266_v30  ;;  %v1305_v30 = vld [vmem:[%s1526_s3 + $0x28] sm:$0xff]   ;;  %v993_v41 = vld [vmem:[%s1525_s2] ss:$0 sm:$0xff]  ;;  %v1315_v12 = vld [vmem:[%s1528_s5 + $0x38] sm:$0xff]  }
  0x32   :  { %1122 = vmatpush3.bf16.msra.mxu1 %v1267_v31  ;;  %1129 = vmatprep.subr.bf16.mxu0 %v1268_v44  ;;  %v1306_v31 = vld [vmem:[%s1526_s3 + $0x30] sm:$0xff]   ;;  %v1058_v13 = vld [vmem:[%s1527_s4] ss:$0 sm:$0xff] }
  0x33   :  { %1151 = vmatprep.subr.bf16.mxu1 %v1269_v45 }
  0x34   :  { %617 = vmatmul.mubr.bf16.vlgmr.msra.gmra.mrb[0].mxu0 %v57_v40 }
  0x35   :  { %658 = vmatmul.mubr.bf16.vlgmr.msra.gmra.mrb[0].mxu1 %v59_v43  ;;  %1130 = vmatpush3.bf16.msra.mxu0 %v1270_v46 }
  0x36   :  { %1152 = vmatpush3.bf16.msra.mxu1 %v1271_v47  ;;  %1131 = vmatprep.subr.bf16.mxu0 %v1272_v48 }
  0x37   :  { %1153 = vmatprep.subr.bf16.mxu1 %v1273_v49  ;;  %698 = vmatprep.mubr.bf16.mxu0 %v62_v16 }
  0x38   :  { %739 = vmatprep.mubr.bf16.mxu1 %v64_v17 }
  0x39   :  { %1132 = vmatpush3.bf16.msra.mxu0 %v1274_v50 }
  0x3a   :  { %1154 = vmatpush3.bf16.msra.mxu1 %v1275_v51  ;;  %1133 = vmatprep.subr.bf16.mxu0 %v1276_v52 }
  0x3b   :  { %1155 = vmatprep.subr.bf16.mxu1 %v1277_v53 }
  0x3d   :  { %1134 = vmatpush3.bf16.msra.mxu0 %v1278_v54 }
  0x3e   :  { %1156 = vmatpush3.bf16.msra.mxu1 %v1279_v55  ;;  %1135 = vmatprep.subr.bf16.mxu0 %v1280_v56 }
  0x3f   :  { %1157 = vmatprep.subr.bf16.mxu1 %v1281_v57 }
  0x41   :  { %1136 = vmatpush3.bf16.msra.mxu0 %v1282_v58 }
  0x42   :  { %1158 = vmatpush3.bf16.msra.mxu1 %v1283_v59  ;;  %1137 = vmatprep.subr.bf16.mxu0 %v1284_v60 }
  0x43   :  { %1159 = vmatprep.subr.bf16.mxu1 %v1285_v61 }
  0x45   :  { %1138 = vmatpush3.bf16.msra.mxu0 %v1286_v62 }
  0x46   :  { %1160 = vmatpush3.bf16.msra.mxu1 %v1287_v63  ;;  %1139 = vmatprep.subr.bf16.mxu0 %v1288_v0 }
  0x47   :  { %1161 = vmatprep.subr.bf16.mxu1 %v1289_v1 }
  0x49   :  { %1140 = vmatpush3.bf16.msra.mxu0 %v1290_v2 }
  0x4a   :  { %1162 = vmatpush3.bf16.msra.mxu1 %v1291_v3  ;;  %1141 = vmatprep.subr.bf16.mxu0 %v1292_v4 }
  0x4b   :  { %1163 = vmatprep.subr.bf16.mxu1 %v1293_v5 }
  0x4d   :  { %1142 = vmatpush3.bf16.msra.mxu0 %v1294_v6 }
  0x4e   :  { %1164 = vmatpush3.bf16.msra.mxu1 %v1295_v7  ;;  %1143 = vmatprep.subr.bf16.mxu0 %v1296_v8 }
  0x4f   :  { %1165 = vmatprep.subr.bf16.mxu1 %v1297_v9 }
  0x51   :  { %1144 = vmatpush3.bf16.msra.mxu0 %v1298_v10 }
  0x52   :  { %1166 = vmatpush3.bf16.msra.mxu1 %v1299_v11  ;;  %1191 = vmatprep.subr.bf16.mxu0 %v1343_v25  ;;  %v1314_v11 = vld [vmem:[%s1528_s5 + $0x30] sm:$0xff]  }
  0x53   :  { %1211 = vmatprep.subr.bf16.mxu1 %v1343_v25 }
  0x54   :  { %699 = vmatmul.mubr.bf16.vlgmr.msra.gmra.mrb[4].mxu0 %v61_v21 }
  0x55   :  { %740 = vmatmul.mubr.bf16.vlgmr.msra.gmra.mrb[4].mxu1 %v63_v23  ;;  %1192 = vmatpush3.bf16.msra.mxu0 %v1300_v24  ;;  %v1067_v23 = vld [vmem:[%s1529_s6] ss:$0 sm:$0xff] }
  0x56   :  { %1193 = vmatprep.subr.bf16.mxu0 %v1343_v25  ;;  %1207 = vmatprep.mubr.msk.bf16.mxu0 %vm1344_vm0, %v1343_v25 }
  0x57   :  { %1227 = vmatprep.mubr.msk.bf16.mxu1 %vm1344_vm0, %v1343_v25  ;;  %1212 = vmatpush3.bf16.msra.mxu1 %v1308_v33 }
  0x58   :  { %1213 = vmatprep.subr.bf16.mxu1 %v1343_v25 }
  0x59   :  { %1194 = vmatpush3.bf16.msra.mxu0 %v1301_v26 }
  0x5a   :  { %1195 = vmatprep.subr.bf16.mxu0 %v1343_v25 }
  0x5b   :  { %1214 = vmatpush3.bf16.msra.mxu1 %v1309_v34 }
  0x5c   :  { %1215 = vmatprep.subr.bf16.mxu1 %v1343_v25 }
  0x5d   :  { %1196 = vmatpush3.bf16.msra.mxu0 %v1302_v27 }
  0x5e   :  { %1197 = vmatprep.subr.bf16.mxu0 %v1343_v25 }
  0x5f   :  { %1216 = vmatpush3.bf16.msra.mxu1 %v1310_v35 }
  0x60   :  { %1217 = vmatprep.subr.bf16.mxu1 %v1343_v25 }
  0x61   :  { %1198 = vmatpush3.bf16.msra.mxu0 %v1303_v28 }
  0x62   :  { %1199 = vmatprep.subr.bf16.mxu0 %v1343_v25 }
  0x63   :  { %1218 = vmatpush3.bf16.msra.mxu1 %v1311_v36 }
  0x64   :  { %1219 = vmatprep.subr.bf16.mxu1 %v1343_v25 }
  0x65   :  { %1200 = vmatpush3.bf16.msra.mxu0 %v1304_v29 }
  0x66   :  { %1201 = vmatprep.subr.bf16.mxu0 %v1343_v25 }
  0x67   :  { %1220 = vmatpush3.bf16.msra.mxu1 %v1312_v37 }
  0x68   :  { %1221 = vmatprep.subr.bf16.mxu1 %v1343_v25 }
  0x69   :  { %1202 = vmatpush3.bf16.msra.mxu0 %v1305_v30 }
  0x6a   :  { %1203 = vmatprep.subr.bf16.mxu0 %v1343_v25 }
  0x6b   :  { %1222 = vmatpush3.bf16.msra.mxu1 %v1313_v38 }
  0x6c   :  { %1223 = vmatprep.subr.bf16.mxu1 %v1343_v25 }
  0x6d   :  { %1204 = vmatpush3.bf16.msra.mxu0 %v1306_v31 }
  0x6e   :  { %1205 = vmatprep.subr.bf16.mxu0 %v1343_v25 }
  0x6f   :  { %1224 = vmatpush3.bf16.msra.mxu1 %v1314_v11 }
  0x70   :  { %1225 = vmatprep.subr.bf16.mxu1 %v1343_v25 }
  0x71   :  { %1206 = vmatpush3.bf16.msra.mxu0 %v1307_v32 }
  0x73   :  { %1226 = vmatpush3.bf16.msra.mxu1 %v1315_v12 }
 0x107   :  { %v1101_v39 = vpop.f32.mrb[0].mxu0 }
 0x108   :  { %v1123_v40 = vpop.f32.mrb[0].mxu1  ;;  %v1102_v42 = vpop.f32.mrb[1].mxu0 }
 0x109   :  { %v1103_v43 = vadd.f32 %v1102_v42, %v1101_v39  ;;  %v1124_v44 = vpop.f32.mrb[1].mxu1  ;;  %v1104_v45 = vpop.f32.mrb[2].mxu0 }
 0x10a   :  { %v1125_v46 = vadd.f32 %v1124_v44, %v1123_v40  ;;  %v1126_v47 = vpop.f32.mrb[2].mxu1  ;;  %v1105_v48 = vpop.f32.mrb[3].mxu0 }
 0x10b   :  { %v619_v49 = vadd.f32 %v1103_v43, %v993_v41  ;;  %v1106_v50 = vadd.f32 %v1105_v48, %v1104_v45  ;;  %v1127_v51 = vpop.f32.mrb[3].mxu1 }
 0x10c   :  { %v1128_v52 = vadd.f32 %v1127_v51, %v1126_v47 }
 0x10d   :  { %v660_v53 = vadd.f32 %v1125_v46, %v619_v49  ;;  %v622_v54 = vadd.f32 %v1106_v50, %v993_v41 }
 0x10f   :  { %v663_v55 = vadd.f32 %v1128_v52, %v622_v54 }
 0x127   :  { %v1145_v56 = vpop.f32.mrb[4].mxu0 }
 0x128   :  { %v1167_v57 = vpop.f32.mrb[4].mxu1  ;;  %v1146_v58 = vpop.f32.mrb[5].mxu0 }
 0x129   :  { %v1147_v59 = vadd.f32 %v1146_v58, %v1145_v56  ;;  %v1168_v60 = vpop.f32.mrb[5].mxu1  ;;  %v1148_v61 = vpop.f32.mrb[6].mxu0 }
 0x12a   :  { %v1169_v62 = vadd.f32 %v1168_v60, %v1167_v57  ;;  %v1170_v63 = vpop.f32.mrb[6].mxu1  ;;  %v1149_v0 = vpop.f32.mrb[7].mxu0 }
 0x12b   :  { %v701_v1 = vadd.f32 %v1147_v59, %v660_v53  ;;  %v1150_v2 = vadd.f32 %v1149_v0, %v1148_v61  ;;  %v1171_v3 = vpop.f32.mrb[7].mxu1 }
 0x12c   :  { %v1172_v4 = vadd.f32 %v1171_v3, %v1170_v63 }
 0x12d   :  { %v742_v5 = vadd.f32 %v1169_v62, %v701_v1  ;;  %v704_v6 = vadd.f32 %v1150_v2, %v663_v55 }
 0x12f   :  { %v745_v7 = vadd.f32 %v1172_v4, %v704_v6  ;;  %v748_v8 = vmax.f32 %v742_v5, 0.0 }
 0x131   :  { %v749_v9 = vmax.f32 %v745_v7, 0.0 }
 0x133   :  { %v750_v10 = vpack.c.bf16 %v749_v9, %v748_v8 }
 0x135   :  { %1208 = vmatmul.mubr.bf16.vlgmr.msra.gmra.mrb[8].mxu0 %v750_v10 }
 0x208   :  { %v856_v14 = vpop.f32.mrb[8].mxu0 }
 0x209   :  { %v857_v15 = vadd.f32 %v1058_v13, %v856_v14  ;;  %v1209_v16 = vpop.f32.mrb[9].mxu0 }
 0x20a   :  { %v859_v17 = vpop.f32.mrb[10].mxu0 }
 0x20b   :  { %v860_v18 = vadd.f32 %v1058_v13, %v859_v17  ;;  %v1210_v19 = vpop.f32.mrb[11].mxu0  ;;  %v863_v20 = vmax.f32 %v857_v15, 0.0 }
 0x20d   :  { %v864_v21 = vmax.f32 %v860_v18, 0.0 }
 0x20f   :  { %v865_v22 = vpack.c.bf16 %v864_v21, %v863_v20 }
 0x211   :  { %1228 = vmatmul.mubr.bf16.vlgmr.msra.gmra.mrb[8].mxu1 %v865_v22 }
 0x2e4   :  { %v971_v24 = vpop.f32.mrb[8].mxu1 }
 0x2e5   :  { %v1229_v25 = vpop.f32.mrb[9].mxu1  ;;  %v972_v27 = vadd.f32 %v1067_v23, %v971_v24 }
 0x2e6   :  { %v974_v26 = vpop.f32.mrb[10].mxu1 }
 0x2e7   :  { %v975_v28 = vadd.f32 %v1067_v23, %v974_v26  ;;  %v1230_v29 = vpop.f32.mrb[11].mxu1 }
 0x2e9   :  { %v1083_v30 = vpack.c.bf16 %v975_v28, %v972_v27 }
 0x2eb   :  { %1084 = vst [vmem:[%s1530_s7] sm:$0xff] %v1083_v30  }
 0x2ec   :  { %992 = vsyncpa [#allocation3], 1 }

</bundles_post_ra>
